<compile_context>
chip_gen: v6e
topology: v6e:2x2x1
jax: 0.10.0
libtpu: 0.0.40
codegen_flags: <defaults>
</compile_context>

<pallas_src>
import functools

import jax
import jax.numpy as jnp
import numpy as np
from jax import lax
from jax.experimental import pallas as pl
from jax.experimental.pallas import tpu as pltpu


_LANE = 128
_NEG = -1e30  # class-padding logit: exp underflows to exactly 0, no inf-inf NaN


def _round_up(x, m):
    return ((x + m - 1) // m) * m


def _dsc_kernel(pred_ref, tgt_ref, out_ref, *, smooth, ignore_index, num_classes):
    x = pred_ref[...].astype(jnp.float32)      # (TB, Cp)  classes on lane axis
    t = tgt_ref[...]                           # (TB, 1)   int32 labels

    # Row-wise softmax; padded class lanes hold -1e30 -> exp underflows to 0.
    m = jnp.max(x, axis=1, keepdims=True)
    e = jnp.exp(x - m)
    s = jnp.sum(e, axis=1, keepdims=True)
    p = e * pl.reciprocal(s, approx=False)     # 1 reciprocal/row + cheap VPU mul

    cls = lax.broadcasted_iota(jnp.int32, x.shape, 1)          # (TB, Cp)
    onehot = (cls == t).astype(jnp.float32)                    # (TB, Cp)
    valid = t != ignore_index                                  # (TB, 1) bool

    pq = (1.0 - p) * p
    num = pq * onehot + smooth
    den = pq + onehot + smooth
    dice = 1.0 - num / den                                     # (TB, Cp)

    # Keep: valid (non-ignored, non-padding) rows, real classes, drop class 0
    # (loss = loss[1:]).  jnp.where (not multiply) so NaNs from padded lanes
    # (smooth=0 -> 0/0) never leak into the sum.
    keep = valid & (cls >= 1) & (cls < num_classes)
    contrib = jnp.where(keep, dice, 0.0)

    # Per-sublane partial sums: regroup full (8,128) vregs (layout-preserving
    # reshape) and add them together -> one (8, Cp) vreg, no XLU reduction.
    tb, cp = contrib.shape
    sums = jnp.sum(contrib.reshape(tb // 8, 8, cp), axis=0)    # (8, Cp)
    out_ref[...] = sums[None, :, :]                            # (1, 8, Cp) unmasked store


def dsc_loss(prediction, target, *, smooth=0.0, ignore_index=-100, tile_b=1024):
    """prediction: [B, C] float (f32 or bf16), target: [B] int. Returns scalar loss."""
    B, C = prediction.shape
    itemsize = jnp.dtype(prediction.dtype).itemsize
    sub = 16 if itemsize < 4 else 8            # bf16 packs 2 rows per sublane

    C_pad = _round_up(max(C, 1), _LANE)        # lane-dense class axis
    tile_b = _round_up(max(sub, min(tile_b, _round_up(B, sub))), sub)
    B_pad = _round_up(B, tile_b)
    num_tiles = B_pad // tile_b

    # Pad: extra class lanes get -1e30 (softmax-neutral), extra rows are ignored.
    pred = jnp.pad(prediction, ((0, B_pad - B), (0, C_pad - C)),
                   constant_values=_NEG)
    tgt = jnp.pad(target.astype(jnp.int32), (0, B_pad - B),
                  constant_values=ignore_index).reshape(B_pad, 1)

    kernel = functools.partial(_dsc_kernel, smooth=float(smooth),
                               ignore_index=int(ignore_index), num_classes=C)

    cost = pl.CostEstimate(
        flops=20 * B_pad * C_pad,
        transcendentals=2 * B_pad * C_pad + B_pad,   # exp + div per elem, rcp per row
        bytes_accessed=B_pad * C_pad * itemsize + B_pad * 4
                       + num_tiles * 8 * C_pad * 4,
    )

    partials = pl.pallas_call(
        kernel,
        out_shape=jax.ShapeDtypeStruct((num_tiles, 8, C_pad), jnp.float32),
        grid_spec=pltpu.PrefetchScalarGridSpec(
            num_scalar_prefetch=0,
            grid=(num_tiles,),
            in_specs=[
                pl.BlockSpec((tile_b, C_pad), lambda i: (i, 0)),
                pl.BlockSpec((tile_b, 1), lambda i: (i, 0)),
            ],
            out_specs=pl.BlockSpec((1, 8, C_pad), lambda i: (i, 0, 0)),
        ),
        compiler_params=pltpu.CompilerParams(
            dimension_semantics=("parallel",)),      # tiles independent -> megacore on v7x
        cost_estimate=cost,
    )(pred, tgt)

    n_valid = jnp.sum((target != ignore_index).astype(jnp.float32))
    total = jnp.sum(partials)
    # NOTE: if every row is ignored, n_valid == 0 and this NaNs — same as the
    # PyTorch reference (mean over an empty tensor).
    return total / (n_valid * (C - 1))


def _reference_dsc_loss(prediction, target, smooth=0.0, ignore_index=-100):
    p = jax.nn.softmax(prediction.astype(jnp.float32), axis=1)
    keep = target != ignore_index
    p = p[keep]
    t = jax.nn.one_hot(target[keep], prediction.shape[1], dtype=jnp.float32)
    num = (1.0 - p) * p * t + smooth
    den = (1.0 - p) * p + t + smooth
    dice = 1.0 - num / den
    loss = jnp.mean(dice, axis=0)
    return jnp.mean(loss[1:])


if __name__ == "__main__":
    key = jax.random.PRNGKey(0)
    k1, k2 = jax.random.split(key)

    B, C = 16, 8
    prediction = jax.random.normal(k1, (B, C), dtype=jnp.float32)
    target = jax.random.randint(k2, (B,), 0, C, dtype=jnp.int32)
    # Mark a couple of rows as ignored to exercise the ignore_index path.
    target = target.at[3].set(-100).at[11].set(-100)

    loss = dsc_loss(prediction, target, smooth=0.0, ignore_index=-100)
    loss = jax.block_until_ready(loss)

    ref = _reference_dsc_loss(prediction, target, smooth=0.0, ignore_index=-100)
    np.testing.assert_allclose(np.asarray(loss), np.asarray(ref), rtol=1e-5, atol=1e-6)

    print("KERNEL_OK")
</pallas_src>

<mosaic_0001>
module attributes {stable_mosaic.version = 11 : i64} {
  func.func @_dsc_kernel(%arg0: i32, %arg1: memref<16x128xf32, #tpu.memory_space<vmem>>, %arg2: memref<16x1xi32, #tpu.memory_space<vmem>>, %arg3: memref<1x8x128xf32, #tpu.memory_space<vmem>>) attributes {dimension_semantics = [#tpu.dimension_semantics<parallel>], iteration_bounds = array<i64: 1>, scalar_prefetch = 0 : i64, scratch_operands = 0 : i64, tpu.core_type = #tpu.core_type<tc>, window_params = [{transform_indices = @transform_0, window_bounds = array<i64: 16, 128>}, {transform_indices = @transform_1, window_bounds = array<i64: 16, 1>}, {transform_indices = @transform_2, window_bounds = array<i64: 1, 8, 128>}]} {
    %c0 = arith.constant 0 : index
    %c0_0 = arith.constant 0 : index
    %0 = vector.load %arg1[%c0, %c0_0] : memref<16x128xf32, #tpu.memory_space<vmem>>, vector<16x128xf32>
    %c0_1 = arith.constant 0 : index
    %c0_2 = arith.constant 0 : index
    %1 = vector.load %arg2[%c0_1, %c0_2] : memref<16x1xi32, #tpu.memory_space<vmem>>, vector<16x1xi32>
    %cst = arith.constant dense<0xFF800000> : vector<16xf32>
    %2 = vector.multi_reduction <maximumf>, %0, %cst [1] : vector<16x128xf32> to vector<16xf32>
    %3 = vector.shape_cast %2 : vector<16xf32> to vector<16x1xf32>
    %4 = vector.broadcast %3 : vector<16x1xf32> to vector<16x128xf32>
    %5 = arith.subf %0, %4 : vector<16x128xf32>
    %6 = math.exp %5 : vector<16x128xf32>
    %cst_3 = arith.constant dense<0.000000e+00> : vector<16xf32>
    %7 = vector.multi_reduction <add>, %6, %cst_3 [1] : vector<16x128xf32> to vector<16xf32>
    %8 = vector.shape_cast %7 : vector<16xf32> to vector<16x1xf32>
    %9 = tpu.reciprocal %8 : vector<16x1xf32> -> vector<16x1xf32>
    %10 = vector.broadcast %9 : vector<16x1xf32> to vector<16x128xf32>
    %11 = arith.mulf %6, %10 : vector<16x128xf32>
    %12 = tpu.iota {dimensions = array<i32: 1>} : vector<16x128xi32>
    %13 = vector.broadcast %1 : vector<16x1xi32> to vector<16x128xi32>
    %14 = arith.cmpi eq, %12, %13 : vector<16x128xi32>
    %15 = arith.extui %14 : vector<16x128xi1> to vector<16x128xi32>
    %16 = arith.sitofp %15 : vector<16x128xi32> to vector<16x128xf32>
    %c-100_i32 = arith.constant -100 : i32
    %17 = vector.broadcast %c-100_i32 : i32 to vector<16x1xi32>
    %18 = arith.cmpi ne, %1, %17 : vector<16x1xi32>
    %cst_4 = arith.constant 1.000000e+00 : f32
    %19 = vector.broadcast %cst_4 : f32 to vector<16x128xf32>
    %20 = arith.subf %19, %11 : vector<16x128xf32>
    %21 = arith.mulf %20, %11 : vector<16x128xf32>
    %22 = arith.mulf %21, %16 : vector<16x128xf32>
    %cst_5 = arith.constant 0.000000e+00 : f32
    %23 = vector.broadcast %cst_5 : f32 to vector<16x128xf32>
    %24 = arith.addf %22, %23 : vector<16x128xf32>
    %25 = arith.addf %21, %16 : vector<16x128xf32>
    %cst_6 = arith.constant 0.000000e+00 : f32
    %26 = vector.broadcast %cst_6 : f32 to vector<16x128xf32>
    %27 = arith.addf %25, %26 : vector<16x128xf32>
    %28 = arith.divf %24, %27 : vector<16x128xf32>
    %cst_7 = arith.constant 1.000000e+00 : f32
    %29 = vector.broadcast %cst_7 : f32 to vector<16x128xf32>
    %30 = arith.subf %29, %28 : vector<16x128xf32>
    %c1_i32 = arith.constant 1 : i32
    %31 = vector.broadcast %c1_i32 : i32 to vector<16x128xi32>
    %32 = arith.cmpi sge, %12, %31 : vector<16x128xi32>
    %33 = vector.broadcast %18 : vector<16x1xi1> to vector<16x128xi1>
    %34 = arith.andi %33, %32 : vector<16x128xi1>
    %c8_i32 = arith.constant 8 : i32
    %35 = vector.broadcast %c8_i32 : i32 to vector<16x128xi32>
    %36 = arith.cmpi slt, %12, %35 : vector<16x128xi32>
    %37 = arith.andi %34, %36 : vector<16x128xi1>
    %cst_8 = arith.constant 0.000000e+00 : f32
    %38 = vector.broadcast %cst_8 : f32 to vector<16x128xf32>
    %39 = arith.select %37, %30, %38 : vector<16x128xi1>, vector<16x128xf32>
    %40 = vector.shape_cast %39 : vector<16x128xf32> to vector<2x8x128xf32>
    %cst_9 = arith.constant dense<0.000000e+00> : vector<8x128xf32>
    %41 = vector.multi_reduction <add>, %40, %cst_9 [0] : vector<2x8x128xf32> to vector<8x128xf32>
    %42 = vector.shape_cast %41 : vector<8x128xf32> to vector<1x8x128xf32>
    %c0_10 = arith.constant 0 : index
    %c0_11 = arith.constant 0 : index
    %c0_12 = arith.constant 0 : index
    %43 = vector.load %arg3[%c0_10, %c0_11, %c0_12] : memref<1x8x128xf32, #tpu.memory_space<vmem>>, vector<1x8x128xf32>
    tpu.vector_store %arg3[%c0_10, %c0_11, %c0_12], %42 {strides = array<i32>} : memref<1x8x128xf32, #tpu.memory_space<vmem>>, vector<1x8x128xf32>,
    return
  }
  func.func @transform_0(%arg0: i32) -> (i32, i32) {
    %c0_i32 = arith.constant 0 : i32
    %c0_i32_0 = arith.constant 0 : i32
    return %arg0, %c0_i32 : i32, i32
  }
  func.func @transform_1(%arg0: i32) -> (i32, i32) {
    %c0_i32 = arith.constant 0 : i32
    %c0_i32_0 = arith.constant 0 : i32
    return %arg0, %c0_i32 : i32, i32
  }
  func.func @transform_2(%arg0: i32) -> (i32, i32, i32) {
    %c0_i32 = arith.constant 0 : i32
    %c0_i32_0 = arith.constant 0 : i32
    %c0_i32_1 = arith.constant 0 : i32
    return %arg0, %c0_i32, %c0_i32_0 : i32, i32, i32
  }
}

</mosaic_0001>

<bundles_post_ra>
// kernel: tpu_custom_call.1
= control target key start
LH: loop header
LB: loop body
LE: loop exit
PB: predicated region body
PF: predicated region fallthrough
CT: control target
= control target key end

     0   :  { %s176_s0 = inlined_call_operand.vmem [shape: f32[16,128], index: 0, kind: input, shape index: {}]   ;;  %s177_s1 = inlined_call_operand.vmem [shape: s32[16,1], index: 1, kind: input, shape index: {}]   ;;  %s178_s2 = inlined_call_operand.hbm [shape: f32[1,8,128], index: 2, kind: output, shape index: {}]  }
   0x1   :  { %v12_v0 = vld [vmem:[%s176_s0] sm:$0xff] }
   0x2   :  { %7 = vsyncpa [#allocation3], 0  ;;  %16 = vmax.xlane.f32.xlu0 %v12_v0  ;;  %v13_v1 = vld [vmem:[%s176_s0 + $0x8] sm:$0xff]  ;;  %v143_v2 = vmov 0   ;;  %v14_v3 = vld [vmem:[%s177_s1] sm:$0xff]  ;;  %v34_v17 = vlaneseq  ;;  %v144_v25 = vmov 0.0  }
   0x3   :  { %108 = vset.pattern.permute.xlu1 %v143_v2  ;;  %107 = vset.pattern.permute.xlu0 %v143_v2  ;;  %vm48_vm0 = vcmp.ne.s32.totalorder %v14_v3, 4294967196  ;;  %v15_v13 = vld [vmem:[%s177_s1 + $0x8] sm:$0xff]  ;;  %s145_s1 = smov [#allocation2]  }
   0x4   :  { %v69_v4 = vsel %vm48_vm0, 1, %v143_v2  ;;  %vm49_vm1 = vcmp.ne.s32.totalorder %v15_v13, 4294967196  ;;  %v35_v18 = vand.u32 127, %v34_v17  ;;  %s94_s16 = sshll.u32 %s145_s1, 4  ;;  %s95_s16 = int_to_ptr.vmem [resolvable:$true] %s94_s16 }
   0x5   :  { %v70_v14 = vsel %vm49_vm1, 1, %v143_v2  ;;  %s121_s17 = scalar_lea.vmem %s95_s16, 128  ;;  %p126_p1 = scmp.lt.s32.totalorder %s95_s16, %s95_s16 }
   0x6   :  { %18 = vmax.xlane.f32.xlu0 %v13_v1  ;;  %vm68_vm4 = vcmp.ge.s32.totalorder %v35_v18, 1  ;;  %vm81_vm7 = vcmp.lt.s32.totalorder %v35_v18, 8  ;;  %p122_p0 = scmp.ne.s32.totalorder %s95_s16, %s121_s17  ;;  %p127_p2 = scmp.lt.s32.totalorder %s121_s17, %s121_s17 }
   0x8   :  { %p128_p3 = por %p127_p2, %p126_p1 }
   0xa   :  { %p129_p4 = pnand %p128_p3, %p122_p0 }
  0x1c   :  { %37 = vperm.xlu0 %107, %v14_v3  }
  0x8b   :  { %v17_v5 = vpop.xlane.xlu0 %16 }
  0x8c   :  { %v20_v6 = vsub.f32 %v12_v0, %v17_v5 }
  0x8e   :  { %v22_v7 = vmul.f32 1.442695, %v20_v6 }
  0x8f   :  { %v19_v8 = vpop.xlane.xlu0 %18 }
  0x90   :  { %109 = vpow2.f32 %v22_v7  ;;  %v21_v9 = vsub.f32 %v13_v1, %v19_v8 }
  0x92   :  { %v24_v10 = vmul.f32 1.442695, %v21_v9 }
  0x94   :  { %111 = vpow2.f32 %v24_v10 }
  0x97   :  { %v38_v19 = vpop.permute.xlu0 %37 }
  0x98   :  { %vm42_vm2 = vcmp.eq.s32.totalorder %v35_v18, %v38_v19 }
  0x99   :  { %v102_v26 = vsel %vm42_vm2, 1.0, %v144_v25 }
  0x9d   :  { %v110_v11 = vpop.eup %109 }
  0x9e   :  { %26 = vadd.xlane.f32.xlu1 %v110_v11 }
  0xa1   :  { %v112_v12 = vpop.eup %111 }
  0xa2   :  { %28 = vadd.xlane.f32.xlu1 %v112_v12 }
  0xb3   :  { %40 = vperm.xlu1 %108, %v15_v13  }
  0xb7   :  { %72 = vperm.xlu1 %108, %v69_v4  }
  0xbb   :  { %75 = vperm.xlu1 %108, %v70_v14  }
 0x127   :  { %v27_v15 = vpop.xlane.xlu1 %26 }
 0x128   :  { %113 = vrcp.f32 %v27_v15 }
 0x12b   :  { %v29_v16 = vpop.xlane.xlu1 %28 }
 0x12c   :  { %115 = vrcp.f32 %v29_v16 }
 0x12f   :  { %v41_v24 = vpop.permute.xlu1 %40 }
 0x130   :  { %vm43_vm3 = vcmp.eq.s32.totalorder %v35_v18, %v41_v24 }
 0x131   :  { %v103_v31 = vsel %vm43_vm3, 1.0, %v144_v25 }
 0x133   :  { %v73_v34 = vpop.permute.xlu1 %72 }
 0x134   :  { %vm77_vm5 = vcmp.eq.s32.totalorder %v73_v34, 1 }
 0x135   :  { %v114_v20 = vpop.eup %113  ;;  %vm79_vm8 = vmand %vm77_vm5, %vm68_vm4 }
 0x136   :  { %v32_v21 = vmul.f32 %v114_v20, %v110_v11  ;;  %vm82_vm10 = vmand %vm79_vm8, %vm81_vm7 }
 0x137   :  { %v76_v36 = vpop.permute.xlu1 %75 }
 0x138   :  { %v50_v22 = vsub.f32 1.0, %v32_v21  ;;  %vm78_vm6 = vcmp.eq.s32.totalorder %v76_v36, 1 }
 0x139   :  { %v116_v23 = vpop.eup %115  ;;  %vm80_vm9 = vmand %vm78_vm6, %vm68_vm4 }
 0x13a   :  { %v33_v27 = vmul.f32 %v116_v23, %v112_v12  ;;  %v52_v28 = vmul.f32 %v50_v22, %v32_v21  ;;  %vm83_vm11 = vmand %vm80_vm9, %vm81_vm7 }
 0x13c   :  { %v51_v29 = vsub.f32 1.0, %v33_v27  ;;  %v58_v30 = vadd.f32 %v102_v26, %v52_v28  ;;  %v54_v35 = vmul.f32 %v102_v26, %v52_v28 }
 0x13e   :  { %v53_v32 = vmul.f32 %v51_v29, %v33_v27  ;;  %117 = vrcp.f32 %v58_v30 }
 0x140   :  { %v59_v33 = vadd.f32 %v103_v31, %v53_v32  ;;  %v55_v39 = vmul.f32 %v103_v31, %v53_v32 }
 0x142   :  { %119 = vrcp.f32 %v59_v33 }
 0x14b   :  { %v118_v37 = vpop.eup %117 }
 0x14c   :  { %v63_v38 = vmul.f32 %v118_v37, %v54_v35 }
 0x14e   :  { %v66_v42 = vsub.f32 1.0, %v63_v38 }
 0x14f   :  { %v120_v40 = vpop.eup %119 }
 0x150   :  { %v65_v41 = vmul.f32 %v120_v40, %v55_v39  ;;  %v84_v45 = vsel %vm82_vm10, %v66_v42, 0.0 }
 0x152   :  { %v67_v43 = vsub.f32 1.0, %v65_v41 }
 0x154   :  { %v85_v44 = vsel %vm83_vm11, %v67_v43, 0.0 }
 0x155   :  { %v86_v46 = vadd.f32 %v85_v44, %v84_v45 }
 0x157   :  { %87 = vst [vmem:[#allocation2] sm:$0xff] %v86_v46 }
 0x158   :  { %132 = shalt.err (!%p129_p4)
}
 0x159   :  { %97 = dma.vmem_to_hbm [thread:$0]  %s95_s16, 128, %s178_s2, [#allocation3]  }
 0x15a   :  { %141 = dma.done.wait [#allocation3], 128  }
 0x15b   :  { %142 = vsyncadd [#allocation3], 4294967168 }
 0x15c   :  { %101 = vsyncpa [#allocation3], 1 }

</bundles_post_ra>
